<compile_context>
chip_gen: v6e
topology: v6e:2x2x1
jax: 0.10.0
libtpu: 0.0.40
codegen_flags: <defaults>
</compile_context>

<pallas_src>
import functools

import jax
import jax.numpy as jnp
from jax.experimental import pallas as pl
from jax.experimental.pallas import tpu as pltpu


def _round_up(x, m):
    return ((x + m - 1) // m) * m


@functools.partial(jax.jit,
                   static_argnames=("stride", "padding", "dilation", "eps"))
def dil_conv(x, dw, pw, gamma, beta, *, stride, padding, dilation, eps=1e-5):
    """DilConv forward.

    x:  (N, C_in, H, W)      f32, NCHW (PyTorch convention)
    dw: (C_in, 1, kh, kw)    depthwise weight (groups=C_in, bias=False)
    pw: (C_out, C_in, 1, 1)  pointwise 1x1 weight (bias=False)
    gamma, beta: (C_out,)    BatchNorm2d affine params (training-mode batch
                             statistics, biased variance).
    Returns (N, C_out, Ho, Wo) f32, NCHW.
    """
    N, C_in, H, W = x.shape
    C_out = pw.shape[0]
    kh, kw = dw.shape[2], dw.shape[3]
    Hp, Wp = H + 2 * padding, W + 2 * padding
    Ho = (H + 2 * padding - dilation * (kh - 1) - 1) // stride + 1
    Wo = (W + 2 * padding - dilation * (kw - 1) - 1) // stride + 1

    # Flattened-spatial ("row-padded") intermediate: Ho rows of Wp columns, the
    # first Wo of each row are valid.  Pad to a lane-dense multiple of 128.
    Lz = _round_up(Ho * Wp, 128)
    off_max = dilation * ((kh - 1) * Wp + (kw - 1))
    Lf = _round_up(max(Hp * Wp, off_max + stride * (Lz - 1) + 1), 128)

    # ---- host-side layout glue (cheap: one pad + contiguous reshapes) -------
    xp = jnp.pad(x.astype(jnp.float32),
                 ((0, 0), (0, 0), (padding, padding), (padding, padding)))
    xf = xp.reshape(N, C_in, Hp * Wp)
    xf = jnp.pad(xf, ((0, 0), (0, 0), (0, Lf - Hp * Wp)))         # (N,C_in,Lf)

    # depthwise taps rearranged to (kh*kw, C_in, 1); pointwise to (C_out, C_in)
    dwb = jnp.transpose(dw[:, 0, :, :], (1, 2, 0)).reshape(
        kh * kw, C_in, 1).astype(jnp.float32)
    pw2 = pw.reshape(C_out, C_in).astype(jnp.float32)

    # 1.0 for valid flattened-output columns, 0.0 for the row-padding junk.
    m_idx = jnp.arange(Lz)
    mask = ((m_idx < Ho * Wp) & ((m_idx % Wp) < Wo)).astype(
        jnp.float32).reshape(1, Lz)

    M = N * Ho * Wo                      # true element count for BN stats
    inv_m = 1.0 / float(M)

    # ---- kernel A: ReLU + dilated depthwise + pointwise + partial BN stats --
    def _dw_pw_stats_kernel(x_ref, dwb_ref, pw_ref, mask_ref,
                            y_ref, csum_ref, cssq_ref):
        # x_ref block: (1, C_in, Lf).  Each tap is a shifted VMEM read; ReLU is
        # fused on the slice (relu commutes with slicing; padding zeros stay 0).
        acc = jnp.zeros((C_in, Lz), jnp.float32)
        for i in range(kh):
            for j in range(kw):
                off = dilation * (i * Wp + j)
                if stride == 1:
                    patch = jnp.maximum(x_ref[0, :, off:off + Lz], 0.0)
                else:
                    patch = jnp.maximum(
                        x_ref[0, :, pl.ds(off, Lz, stride=stride)], 0.0)
                acc = acc + patch * dwb_ref[i * kw + j]        # (C_in,Lz)*(C_in,1)
        z = acc * mask_ref[...]                                # zero junk columns
        # pointwise 1x1 conv == (C_out, C_in) @ (C_in, Lz) matmul on the MXU
        y = jnp.dot(pw_ref[...], z, preferred_element_type=jnp.float32)
        y_ref[0] = y                                           # lane-dense store
        # per-image partial BN statistics (junk columns are exactly 0)
        csum_ref[0] = jnp.sum(y, axis=1, keepdims=True)        # (C_out, 1)
        cssq_ref[0] = jnp.sum(y * y, axis=1, keepdims=True)

    grid = (N,)
    y, csum, cssq = pl.pallas_call(
        _dw_pw_stats_kernel,
        out_shape=(
            jax.ShapeDtypeStruct((N, C_out, Lz), jnp.float32),
            jax.ShapeDtypeStruct((N, C_out, 1), jnp.float32),
            jax.ShapeDtypeStruct((N, C_out, 1), jnp.float32),
        ),
        grid_spec=pltpu.PrefetchScalarGridSpec(
            num_scalar_prefetch=0,
            grid=grid,
            in_specs=[
                pl.BlockSpec((1, C_in, Lf), lambda n: (n, 0, 0)),
                pl.BlockSpec((kh * kw, C_in, 1), lambda n: (0, 0, 0)),
                pl.BlockSpec((C_out, C_in), lambda n: (0, 0)),
                pl.BlockSpec((1, Lz), lambda n: (0, 0)),
            ],
            out_specs=(
                pl.BlockSpec((1, C_out, Lz), lambda n: (n, 0, 0)),
                pl.BlockSpec((1, C_out, 1), lambda n: (n, 0, 0)),
                pl.BlockSpec((1, C_out, 1), lambda n: (n, 0, 0)),
            ),
        ),
        compiler_params=pltpu.CompilerParams(
            dimension_semantics=("parallel",)),     # safe: per-block partials
    )(xf, dwb, pw2, mask)

    # Tiny (N, C_out) reduction of the per-image partials.
    csum_t = jnp.sum(csum, axis=0)                  # (C_out, 1)
    cssq_t = jnp.sum(cssq, axis=0)                  # (C_out, 1)
    gamma2 = gamma.reshape(C_out, 1).astype(jnp.float32)
    beta2 = beta.reshape(C_out, 1).astype(jnp.float32)

    # ---- kernel B: fused BN (scale/shift computed in-kernel, in-place) ------
    def _bn_apply_kernel(y_ref, csum_ref, cssq_ref, gamma_ref, beta_ref, o_ref):
        mean = csum_ref[...] * inv_m                            # (C_out, 1)
        # TODO(synk): biased-variance via E[y^2]-E[y]^2 can cancel for large
        # activation means; switch to a two-pass/Welford form if needed.
        var = cssq_ref[...] * inv_m - mean * mean
        inv_std = jax.lax.rsqrt(var + eps)
        scale = gamma_ref[...] * inv_std
        shift = beta_ref[...] - mean * scale
        o_ref[0] = y_ref[0] * scale + shift                     # lane-dense

    out_flat = pl.pallas_call(
        _bn_apply_kernel,
        out_shape=jax.ShapeDtypeStruct((N, C_out, Lz), jnp.float32),
        grid_spec=pltpu.PrefetchScalarGridSpec(
            num_scalar_prefetch=0,
            grid=grid,
            in_specs=[
                pl.BlockSpec((1, C_out, Lz), lambda n: (n, 0, 0)),
                pl.BlockSpec((C_out, 1), lambda n: (0, 0)),
                pl.BlockSpec((C_out, 1), lambda n: (0, 0)),
                pl.BlockSpec((C_out, 1), lambda n: (0, 0)),
                pl.BlockSpec((C_out, 1), lambda n: (0, 0)),
            ],
            out_specs=pl.BlockSpec((1, C_out, Lz), lambda n: (n, 0, 0)),
        ),
        input_output_aliases={0: 0},                 # BN writes y in place
        compiler_params=pltpu.CompilerParams(
            dimension_semantics=("parallel",)),
    )(y, csum_t, cssq_t, gamma2, beta2)

    # Drop row-padding junk columns and return NCHW.
    out = out_flat[:, :, :Ho * Wp].reshape(N, C_out, Ho, Wp)[:, :, :, :Wo]
    return out


def _reference(x, dw, pw, gamma, beta, *, stride, padding, dilation, eps=1e-5):
    C_in = x.shape[1]
    xr = jnp.maximum(x, 0.0)
    z = jax.lax.conv_general_dilated(
        xr, dw, window_strides=(stride, stride),
        padding=[(padding, padding), (padding, padding)],
        rhs_dilation=(dilation, dilation),
        dimension_numbers=("NCHW", "OIHW", "NCHW"),
        feature_group_count=C_in)
    y = jax.lax.conv_general_dilated(
        z, pw, window_strides=(1, 1), padding=[(0, 0), (0, 0)],
        dimension_numbers=("NCHW", "OIHW", "NCHW"))
    mean = jnp.mean(y, axis=(0, 2, 3), keepdims=True)
    var = jnp.mean((y - mean) ** 2, axis=(0, 2, 3), keepdims=True)
    return ((y - mean) * jax.lax.rsqrt(var + eps)
            * gamma[None, :, None, None] + beta[None, :, None, None])


if __name__ == "__main__":
    # DilConv(C_in=4, C_out=8, kernel_size=3, stride=1, padding=2, dilation=2)
    N, C_in, H, W = 2, 4, 16, 16
    C_out, k = 8, 3
    stride, padding, dilation = 1, 2, 2

    key = jax.random.PRNGKey(0)
    kx, kdw, kpw = jax.random.split(key, 3)
    x = jax.random.normal(kx, (N, C_in, H, W), dtype=jnp.float32)
    dw = jax.random.normal(kdw, (C_in, 1, k, k), dtype=jnp.float32) * 0.3
    pw = jax.random.normal(kpw, (C_out, C_in, 1, 1), dtype=jnp.float32) * 0.3
    gamma = jnp.ones((C_out,), dtype=jnp.float32)   # BatchNorm2d affine init
    beta = jnp.zeros((C_out,), dtype=jnp.float32)

    out = dil_conv(x, dw, pw, gamma, beta,
                   stride=stride, padding=padding, dilation=dilation)
    out = jax.block_until_ready(out)

    ref = _reference(x, dw, pw, gamma, beta,
                     stride=stride, padding=padding, dilation=dilation)
    Ho = (H + 2 * padding - dilation * (k - 1) - 1) // stride + 1
    Wo = (W + 2 * padding - dilation * (k - 1) - 1) // stride + 1
    assert out.shape == ref.shape == (N, C_out, Ho, Wo)
    assert jnp.allclose(out, ref, atol=1e-3, rtol=1e-3), (
        float(jnp.max(jnp.abs(out - ref))))

    print("KERNEL_OK")
</pallas_src>

<mosaic_0001>
module attributes {stable_mosaic.version = 11 : i64} {
  func.func @_dw_pw_stats_kernel(%arg0: i32, %arg1: memref<1x4x512xf32, #tpu.memory_space<vmem>>, %arg2: memref<9x4x1xf32, #tpu.memory_space<vmem>>, %arg3: memref<8x4xf32, #tpu.memory_space<vmem>>, %arg4: memref<1x384xf32, #tpu.memory_space<vmem>>, %arg5: memref<1x8x384xf32, #tpu.memory_space<vmem>>, %arg6: memref<1x8x1xf32, #tpu.memory_space<vmem>>, %arg7: memref<1x8x1xf32, #tpu.memory_space<vmem>>) attributes {dimension_semantics = [#tpu.dimension_semantics<parallel>], iteration_bounds = array<i64: 2>, scalar_prefetch = 0 : i64, scratch_operands = 0 : i64, tpu.core_type = #tpu.core_type<tc>, window_params = [{transform_indices = @transform_0, window_bounds = array<i64: 1, 4, 512>}, {pipeline_mode = #tpu.pipeline_mode<synchronous>, transform_indices = @transform_1, window_bounds = array<i64: 9, 4, 1>}, {pipeline_mode = #tpu.pipeline_mode<synchronous>, transform_indices = @transform_2, window_bounds = array<i64: 8, 4>}, {pipeline_mode = #tpu.pipeline_mode<synchronous>, transform_indices = @transform_3, window_bounds = array<i64: 1, 384>}, {transform_indices = @transform_4, window_bounds = array<i64: 1, 8, 384>}, {transform_indices = @transform_5, window_bounds = array<i64: 1, 8, 1>}, {transform_indices = @transform_6, window_bounds = array<i64: 1, 8, 1>}]} {
    %cst = arith.constant 0.000000e+00 : f32
    %0 = vector.broadcast %cst : f32 to vector<4x384xf32>
    %c0 = arith.constant 0 : index
    %c0_0 = arith.constant 0 : index
    %c0_1 = arith.constant 0 : index
    %1 = vector.load %arg1[%c0, %c0_0, %c0_1] : memref<1x4x512xf32, #tpu.memory_space<vmem>>, vector<1x4x384xf32>
    %2 = vector.shape_cast %1 : vector<1x4x384xf32> to vector<4x384xf32>
    %cst_2 = arith.constant 0.000000e+00 : f32
    %3 = vector.broadcast %cst_2 : f32 to vector<4x384xf32>
    %4 = arith.maximumf %2, %3 : vector<4x384xf32>
    %c0_3 = arith.constant 0 : index
    %c0_4 = arith.constant 0 : index
    %c0_5 = arith.constant 0 : index
    %5 = vector.load %arg2[%c0_3, %c0_4, %c0_5] : memref<9x4x1xf32, #tpu.memory_space<vmem>>, vector<1x4x1xf32>
    %6 = vector.shape_cast %5 : vector<1x4x1xf32> to vector<4x1xf32>
    %7 = vector.broadcast %6 : vector<4x1xf32> to vector<4x384xf32>
    %8 = arith.mulf %4, %7 : vector<4x384xf32>
    %9 = arith.addf %0, %8 : vector<4x384xf32>
    %c0_6 = arith.constant 0 : index
    %c0_7 = arith.constant 0 : index
    %c2 = arith.constant 2 : index
    %10 = vector.load %arg1[%c0_6, %c0_7, %c2] : memref<1x4x512xf32, #tpu.memory_space<vmem>>, vector<1x4x384xf32>
    %11 = vector.shape_cast %10 : vector<1x4x384xf32> to vector<4x384xf32>
    %cst_8 = arith.constant 0.000000e+00 : f32
    %12 = vector.broadcast %cst_8 : f32 to vector<4x384xf32>
    %13 = arith.maximumf %11, %12 : vector<4x384xf32>
    %c1 = arith.constant 1 : index
    %c0_9 = arith.constant 0 : index
    %c0_10 = arith.constant 0 : index
    %14 = vector.load %arg2[%c1, %c0_9, %c0_10] : memref<9x4x1xf32, #tpu.memory_space<vmem>>, vector<1x4x1xf32>
    %15 = vector.shape_cast %14 : vector<1x4x1xf32> to vector<4x1xf32>
    %16 = vector.broadcast %15 : vector<4x1xf32> to vector<4x384xf32>
    %17 = arith.mulf %13, %16 : vector<4x384xf32>
    %18 = arith.addf %9, %17 : vector<4x384xf32>
    %c0_11 = arith.constant 0 : index
    %c0_12 = arith.constant 0 : index
    %c4 = arith.constant 4 : index
    %19 = vector.load %arg1[%c0_11, %c0_12, %c4] : memref<1x4x512xf32, #tpu.memory_space<vmem>>, vector<1x4x384xf32>
    %20 = vector.shape_cast %19 : vector<1x4x384xf32> to vector<4x384xf32>
    %cst_13 = arith.constant 0.000000e+00 : f32
    %21 = vector.broadcast %cst_13 : f32 to vector<4x384xf32>
    %22 = arith.maximumf %20, %21 : vector<4x384xf32>
    %c2_14 = arith.constant 2 : index
    %c0_15 = arith.constant 0 : index
    %c0_16 = arith.constant 0 : index
    %23 = vector.load %arg2[%c2_14, %c0_15, %c0_16] : memref<9x4x1xf32, #tpu.memory_space<vmem>>, vector<1x4x1xf32>
    %24 = vector.shape_cast %23 : vector<1x4x1xf32> to vector<4x1xf32>
    %25 = vector.broadcast %24 : vector<4x1xf32> to vector<4x384xf32>
    %26 = arith.mulf %22, %25 : vector<4x384xf32>
    %27 = arith.addf %18, %26 : vector<4x384xf32>
    %c0_17 = arith.constant 0 : index
    %c0_18 = arith.constant 0 : index
    %c40 = arith.constant 40 : index
    %28 = vector.load %arg1[%c0_17, %c0_18, %c40] : memref<1x4x512xf32, #tpu.memory_space<vmem>>, vector<1x4x384xf32>
    %29 = vector.shape_cast %28 : vector<1x4x384xf32> to vector<4x384xf32>
    %cst_19 = arith.constant 0.000000e+00 : f32
    %30 = vector.broadcast %cst_19 : f32 to vector<4x384xf32>
    %31 = arith.maximumf %29, %30 : vector<4x384xf32>
    %c3 = arith.constant 3 : index
    %c0_20 = arith.constant 0 : index
    %c0_21 = arith.constant 0 : index
    %32 = vector.load %arg2[%c3, %c0_20, %c0_21] : memref<9x4x1xf32, #tpu.memory_space<vmem>>, vector<1x4x1xf32>
    %33 = vector.shape_cast %32 : vector<1x4x1xf32> to vector<4x1xf32>
    %34 = vector.broadcast %33 : vector<4x1xf32> to vector<4x384xf32>
    %35 = arith.mulf %31, %34 : vector<4x384xf32>
    %36 = arith.addf %27, %35 : vector<4x384xf32>
    %c0_22 = arith.constant 0 : index
    %c0_23 = arith.constant 0 : index
    %c42 = arith.constant 42 : index
    %37 = vector.load %arg1[%c0_22, %c0_23, %c42] : memref<1x4x512xf32, #tpu.memory_space<vmem>>, vector<1x4x384xf32>
    %38 = vector.shape_cast %37 : vector<1x4x384xf32> to vector<4x384xf32>
    %cst_24 = arith.constant 0.000000e+00 : f32
    %39 = vector.broadcast %cst_24 : f32 to vector<4x384xf32>
    %40 = arith.maximumf %38, %39 : vector<4x384xf32>
    %c4_25 = arith.constant 4 : index
    %c0_26 = arith.constant 0 : index
    %c0_27 = arith.constant 0 : index
    %41 = vector.load %arg2[%c4_25, %c0_26, %c0_27] : memref<9x4x1xf32, #tpu.memory_space<vmem>>, vector<1x4x1xf32>
    %42 = vector.shape_cast %41 : vector<1x4x1xf32> to vector<4x1xf32>
    %43 = vector.broadcast %42 : vector<4x1xf32> to vector<4x384xf32>
    %44 = arith.mulf %40, %43 : vector<4x384xf32>
    %45 = arith.addf %36, %44 : vector<4x384xf32>
    %c0_28 = arith.constant 0 : index
    %c0_29 = arith.constant 0 : index
    %c44 = arith.constant 44 : index
    %46 = vector.load %arg1[%c0_28, %c0_29, %c44] : memref<1x4x512xf32, #tpu.memory_space<vmem>>, vector<1x4x384xf32>
    %47 = vector.shape_cast %46 : vector<1x4x384xf32> to vector<4x384xf32>
    %cst_30 = arith.constant 0.000000e+00 : f32
    %48 = vector.broadcast %cst_30 : f32 to vector<4x384xf32>
    %49 = arith.maximumf %47, %48 : vector<4x384xf32>
    %c5 = arith.constant 5 : index
    %c0_31 = arith.constant 0 : index
    %c0_32 = arith.constant 0 : index
    %50 = vector.load %arg2[%c5, %c0_31, %c0_32] : memref<9x4x1xf32, #tpu.memory_space<vmem>>, vector<1x4x1xf32>
    %51 = vector.shape_cast %50 : vector<1x4x1xf32> to vector<4x1xf32>
    %52 = vector.broadcast %51 : vector<4x1xf32> to vector<4x384xf32>
    %53 = arith.mulf %49, %52 : vector<4x384xf32>
    %54 = arith.addf %45, %53 : vector<4x384xf32>
    %c0_33 = arith.constant 0 : index
    %c0_34 = arith.constant 0 : index
    %c80 = arith.constant 80 : index
    %55 = vector.load %arg1[%c0_33, %c0_34, %c80] : memref<1x4x512xf32, #tpu.memory_space<vmem>>, vector<1x4x384xf32>
    %56 = vector.shape_cast %55 : vector<1x4x384xf32> to vector<4x384xf32>
    %cst_35 = arith.constant 0.000000e+00 : f32
    %57 = vector.broadcast %cst_35 : f32 to vector<4x384xf32>
    %58 = arith.maximumf %56, %57 : vector<4x384xf32>
    %c6 = arith.constant 6 : index
    %c0_36 = arith.constant 0 : index
    %c0_37 = arith.constant 0 : index
    %59 = vector.load %arg2[%c6, %c0_36, %c0_37] : memref<9x4x1xf32, #tpu.memory_space<vmem>>, vector<1x4x1xf32>
    %60 = vector.shape_cast %59 : vector<1x4x1xf32> to vector<4x1xf32>
    %61 = vector.broadcast %60 : vector<4x1xf32> to vector<4x384xf32>
    %62 = arith.mulf %58, %61 : vector<4x384xf32>
    %63 = arith.addf %54, %62 : vector<4x384xf32>
    %c0_38 = arith.constant 0 : index
    %c0_39 = arith.constant 0 : index
    %c82 = arith.constant 82 : index
    %64 = vector.load %arg1[%c0_38, %c0_39, %c82] : memref<1x4x512xf32, #tpu.memory_space<vmem>>, vector<1x4x384xf32>
    %65 = vector.shape_cast %64 : vector<1x4x384xf32> to vector<4x384xf32>
    %cst_40 = arith.constant 0.000000e+00 : f32
    %66 = vector.broadcast %cst_40 : f32 to vector<4x384xf32>
    %67 = arith.maximumf %65, %66 : vector<4x384xf32>
    %c7 = arith.constant 7 : index
    %c0_41 = arith.constant 0 : index
    %c0_42 = arith.constant 0 : index
    %68 = vector.load %arg2[%c7, %c0_41, %c0_42] : memref<9x4x1xf32, #tpu.memory_space<vmem>>, vector<1x4x1xf32>
    %69 = vector.shape_cast %68 : vector<1x4x1xf32> to vector<4x1xf32>
    %70 = vector.broadcast %69 : vector<4x1xf32> to vector<4x384xf32>
    %71 = arith.mulf %67, %70 : vector<4x384xf32>
    %72 = arith.addf %63, %71 : vector<4x384xf32>
    %c0_43 = arith.constant 0 : index
    %c0_44 = arith.constant 0 : index
    %c84 = arith.constant 84 : index
    %73 = vector.load %arg1[%c0_43, %c0_44, %c84] : memref<1x4x512xf32, #tpu.memory_space<vmem>>, vector<1x4x384xf32>
    %74 = vector.shape_cast %73 : vector<1x4x384xf32> to vector<4x384xf32>
    %cst_45 = arith.constant 0.000000e+00 : f32
    %75 = vector.broadcast %cst_45 : f32 to vector<4x384xf32>
    %76 = arith.maximumf %74, %75 : vector<4x384xf32>
    %c8 = arith.constant 8 : index
    %c0_46 = arith.constant 0 : index
    %c0_47 = arith.constant 0 : index
    %77 = vector.load %arg2[%c8, %c0_46, %c0_47] : memref<9x4x1xf32, #tpu.memory_space<vmem>>, vector<1x4x1xf32>
    %78 = vector.shape_cast %77 : vector<1x4x1xf32> to vector<4x1xf32>
    %79 = vector.broadcast %78 : vector<4x1xf32> to vector<4x384xf32>
    %80 = arith.mulf %76, %79 : vector<4x384xf32>
    %81 = arith.addf %72, %80 : vector<4x384xf32>
    %c0_48 = arith.constant 0 : index
    %c0_49 = arith.constant 0 : index
    %82 = vector.load %arg4[%c0_48, %c0_49] : memref<1x384xf32, #tpu.memory_space<vmem>>, vector<1x384xf32>
    %83 = vector.broadcast %82 : vector<1x384xf32> to vector<4x384xf32>
    %84 = arith.mulf %81, %83 : vector<4x384xf32>
    %c0_50 = arith.constant 0 : index
    %c0_51 = arith.constant 0 : index
    %85 = vector.load %arg3[%c0_50, %c0_51] : memref<8x4xf32, #tpu.memory_space<vmem>>, vector<8x4xf32>
    %cst_52 = arith.constant dense<0.000000e+00> : vector<8x384xf32>
    %86 = tpu.matmul %85, %84, %cst_52 {dimension_numbers = #tpu.dot_dimension_numbers<[1], [0], [0], [1], [0, 0, 1, 1], [], []>} : vector<8x4xf32>, vector<4x384xf32>, vector<8x384xf32> -> vector<8x384xf32>
    %c0_53 = arith.constant 0 : index
    %c0_54 = arith.constant 0 : index
    %c0_55 = arith.constant 0 : index
    %87 = vector.load %arg5[%c0_53, %c0_54, %c0_55] : memref<1x8x384xf32, #tpu.memory_space<vmem>>, vector<1x8x384xf32>
    %88 = vector.shape_cast %87 : vector<1x8x384xf32> to vector<8x384xf32>
    %89 = vector.shape_cast %86 : vector<8x384xf32> to vector<1x8x384xf32>
    tpu.vector_store %arg5[%c0_53, %c0_54, %c0_55], %89 {strides = array<i32>} : memref<1x8x384xf32, #tpu.memory_space<vmem>>, vector<1x8x384xf32>,
    %cst_56 = arith.constant dense<0.000000e+00> : vector<8xf32>
    %90 = vector.multi_reduction <add>, %86, %cst_56 [1] : vector<8x384xf32> to vector<8xf32>
    %91 = vector.shape_cast %90 : vector<8xf32> to vector<8x1xf32>
    %c0_57 = arith.constant 0 : index
    %c0_58 = arith.constant 0 : index
    %c0_59 = arith.constant 0 : index
    %92 = vector.load %arg6[%c0_57, %c0_58, %c0_59] : memref<1x8x1xf32, #tpu.memory_space<vmem>>, vector<1x8x1xf32>
    %93 = vector.shape_cast %92 : vector<1x8x1xf32> to vector<8x1xf32>
    %94 = vector.shape_cast %91 : vector<8x1xf32> to vector<1x8x1xf32>
    tpu.vector_store %arg6[%c0_57, %c0_58, %c0_59], %94 {strides = array<i32>} : memref<1x8x1xf32, #tpu.memory_space<vmem>>, vector<1x8x1xf32>,
    %95 = arith.mulf %86, %86 : vector<8x384xf32>
    %cst_60 = arith.constant dense<0.000000e+00> : vector<8xf32>
    %96 = vector.multi_reduction <add>, %95, %cst_60 [1] : vector<8x384xf32> to vector<8xf32>
    %97 = vector.shape_cast %96 : vector<8xf32> to vector<8x1xf32>
    %c0_61 = arith.constant 0 : index
    %c0_62 = arith.constant 0 : index
    %c0_63 = arith.constant 0 : index
    %98 = vector.load %arg7[%c0_61, %c0_62, %c0_63] : memref<1x8x1xf32, #tpu.memory_space<vmem>>, vector<1x8x1xf32>
    %99 = vector.shape_cast %98 : vector<1x8x1xf32> to vector<8x1xf32>
    %100 = vector.shape_cast %97 : vector<8x1xf32> to vector<1x8x1xf32>
    tpu.vector_store %arg7[%c0_61, %c0_62, %c0_63], %100 {strides = array<i32>} : memref<1x8x1xf32, #tpu.memory_space<vmem>>, vector<1x8x1xf32>,
    return
  }
  func.func @transform_0(%arg0: i32) -> (i32, i32, i32) {
    %c0_i32 = arith.constant 0 : i32
    %c0_i32_0 = arith.constant 0 : i32
    %c0_i32_1 = arith.constant 0 : i32
    return %arg0, %c0_i32, %c0_i32_0 : i32, i32, i32
  }
  func.func @transform_1(%arg0: i32) -> (i32, i32, i32) {
    %c0_i32 = arith.constant 0 : i32
    %c0_i32_0 = arith.constant 0 : i32
    %c0_i32_1 = arith.constant 0 : i32
    %c0_i32_2 = arith.constant 0 : i32
    return %c0_i32, %c0_i32_0, %c0_i32_1 : i32, i32, i32
  }
  func.func @transform_2(%arg0: i32) -> (i32, i32) {
    %c0_i32 = arith.constant 0 : i32
    %c0_i32_0 = arith.constant 0 : i32
    %c0_i32_1 = arith.constant 0 : i32
    return %c0_i32, %c0_i32_0 : i32, i32
  }
  func.func @transform_3(%arg0: i32) -> (i32, i32) {
    %c0_i32 = arith.constant 0 : i32
    %c0_i32_0 = arith.constant 0 : i32
    %c0_i32_1 = arith.constant 0 : i32
    return %c0_i32, %c0_i32_0 : i32, i32
  }
  func.func @transform_4(%arg0: i32) -> (i32, i32, i32) {
    %c0_i32 = arith.constant 0 : i32
    %c0_i32_0 = arith.constant 0 : i32
    %c0_i32_1 = arith.constant 0 : i32
    return %arg0, %c0_i32, %c0_i32_0 : i32, i32, i32
  }
  func.func @transform_5(%arg0: i32) -> (i32, i32, i32) {
    %c0_i32 = arith.constant 0 : i32
    %c0_i32_0 = arith.constant 0 : i32
    %c0_i32_1 = arith.constant 0 : i32
    return %arg0, %c0_i32, %c0_i32_0 : i32, i32, i32
  }
  func.func @transform_6(%arg0: i32) -> (i32, i32, i32) {
    %c0_i32 = arith.constant 0 : i32
    %c0_i32_0 = arith.constant 0 : i32
    %c0_i32_1 = arith.constant 0 : i32
    return %arg0, %c0_i32, %c0_i32_0 : i32, i32, i32
  }
}

module attributes {stable_mosaic.version = 11 : i64} {
  func.func @_bn_apply_kernel(%arg0: i32, %arg1: memref<1x8x384xf32, #tpu.memory_space<vmem>>, %arg2: memref<8x1xf32, #tpu.memory_space<vmem>>, %arg3: memref<8x1xf32, #tpu.memory_space<vmem>>, %arg4: memref<8x1xf32, #tpu.memory_space<vmem>>, %arg5: memref<8x1xf32, #tpu.memory_space<vmem>>, %arg6: memref<1x8x384xf32, #tpu.memory_space<vmem>>) attributes {dimension_semantics = [#tpu.dimension_semantics<parallel>], iteration_bounds = array<i64: 2>, scalar_prefetch = 0 : i64, scratch_operands = 0 : i64, tpu.core_type = #tpu.core_type<tc>, window_params = [{transform_indices = @transform_0, window_bounds = array<i64: 1, 8, 384>}, {pipeline_mode = #tpu.pipeline_mode<synchronous>, transform_indices = @transform_1, window_bounds = array<i64: 8, 1>}, {pipeline_mode = #tpu.pipeline_mode<synchronous>, transform_indices = @transform_2, window_bounds = array<i64: 8, 1>}, {pipeline_mode = #tpu.pipeline_mode<synchronous>, transform_indices = @transform_3, window_bounds = array<i64: 8, 1>}, {pipeline_mode = #tpu.pipeline_mode<synchronous>, transform_indices = @transform_4, window_bounds = array<i64: 8, 1>}, {transform_indices = @transform_5, window_bounds = array<i64: 1, 8, 384>}]} {
    %c0 = arith.constant 0 : index
    %c0_0 = arith.constant 0 : index
    %0 = vector.load %arg2[%c0, %c0_0] : memref<8x1xf32, #tpu.memory_space<vmem>>, vector<8x1xf32>
    %cst = arith.constant 0.001953125 : f32
    %1 = vector.broadcast %cst : f32 to vector<8x1xf32>
    %2 = arith.mulf %0, %1 : vector<8x1xf32>
    %c0_1 = arith.constant 0 : index
    %c0_2 = arith.constant 0 : index
    %3 = vector.load %arg3[%c0_1, %c0_2] : memref<8x1xf32, #tpu.memory_space<vmem>>, vector<8x1xf32>
    %cst_3 = arith.constant 0.001953125 : f32
    %4 = vector.broadcast %cst_3 : f32 to vector<8x1xf32>
    %5 = arith.mulf %3, %4 : vector<8x1xf32>
    %6 = arith.mulf %2, %2 : vector<8x1xf32>
    %7 = arith.subf %5, %6 : vector<8x1xf32>
    %cst_4 = arith.constant 9.99999974E-6 : f32
    %8 = vector.broadcast %cst_4 : f32 to vector<8x1xf32>
    %9 = arith.addf %7, %8 : vector<8x1xf32>
    %10 = math.rsqrt %9 : vector<8x1xf32>
    %c0_5 = arith.constant 0 : index
    %c0_6 = arith.constant 0 : index
    %11 = vector.load %arg4[%c0_5, %c0_6] : memref<8x1xf32, #tpu.memory_space<vmem>>, vector<8x1xf32>
    %12 = arith.mulf %11, %10 : vector<8x1xf32>
    %c0_7 = arith.constant 0 : index
    %c0_8 = arith.constant 0 : index
    %13 = vector.load %arg5[%c0_7, %c0_8] : memref<8x1xf32, #tpu.memory_space<vmem>>, vector<8x1xf32>
    %14 = arith.mulf %2, %12 : vector<8x1xf32>
    %15 = arith.subf %13, %14 : vector<8x1xf32>
    %c0_9 = arith.constant 0 : index
    %c0_10 = arith.constant 0 : index
    %c0_11 = arith.constant 0 : index
    %16 = vector.load %arg1[%c0_9, %c0_10, %c0_11] : memref<1x8x384xf32, #tpu.memory_space<vmem>>, vector<1x8x384xf32>
    %17 = vector.shape_cast %16 : vector<1x8x384xf32> to vector<8x384xf32>
    %18 = vector.broadcast %12 : vector<8x1xf32> to vector<8x384xf32>
    %19 = arith.mulf %17, %18 : vector<8x384xf32>
    %20 = vector.broadcast %15 : vector<8x1xf32> to vector<8x384xf32>
    %21 = arith.addf %19, %20 : vector<8x384xf32>
    %c0_12 = arith.constant 0 : index
    %c0_13 = arith.constant 0 : index
    %c0_14 = arith.constant 0 : index
    %22 = vector.load %arg6[%c0_12, %c0_13, %c0_14] : memref<1x8x384xf32, #tpu.memory_space<vmem>>, vector<1x8x384xf32>
    %23 = vector.shape_cast %22 : vector<1x8x384xf32> to vector<8x384xf32>
    %24 = vector.shape_cast %21 : vector<8x384xf32> to vector<1x8x384xf32>
    tpu.vector_store %arg6[%c0_12, %c0_13, %c0_14], %24 {strides = array<i32>} : memref<1x8x384xf32, #tpu.memory_space<vmem>>, vector<1x8x384xf32>,
    return
  }
  func.func @transform_0(%arg0: i32) -> (i32, i32, i32) {
    %c0_i32 = arith.constant 0 : i32
    %c0_i32_0 = arith.constant 0 : i32
    %c0_i32_1 = arith.constant 0 : i32
    return %arg0, %c0_i32, %c0_i32_0 : i32, i32, i32
  }
  func.func @transform_1(%arg0: i32) -> (i32, i32) {
    %c0_i32 = arith.constant 0 : i32
    %c0_i32_0 = arith.constant 0 : i32
    %c0_i32_1 = arith.constant 0 : i32
    return %c0_i32, %c0_i32_0 : i32, i32
  }
  func.func @transform_2(%arg0: i32) -> (i32, i32) {
    %c0_i32 = arith.constant 0 : i32
    %c0_i32_0 = arith.constant 0 : i32
    %c0_i32_1 = arith.constant 0 : i32
    return %c0_i32, %c0_i32_0 : i32, i32
  }
  func.func @transform_3(%arg0: i32) -> (i32, i32) {
    %c0_i32 = arith.constant 0 : i32
    %c0_i32_0 = arith.constant 0 : i32
    %c0_i32_1 = arith.constant 0 : i32
    return %c0_i32, %c0_i32_0 : i32, i32
  }
  func.func @transform_4(%arg0: i32) -> (i32, i32) {
    %c0_i32 = arith.constant 0 : i32
    %c0_i32_0 = arith.constant 0 : i32
    %c0_i32_1 = arith.constant 0 : i32
    return %c0_i32, %c0_i32_0 : i32, i32
  }
  func.func @transform_5(%arg0: i32) -> (i32, i32, i32) {
    %c0_i32 = arith.constant 0 : i32
    %c0_i32_0 = arith.constant 0 : i32
    %c0_i32_1 = arith.constant 0 : i32
    return %arg0, %c0_i32, %c0_i32_0 : i32, i32, i32
  }
}

</mosaic_0001>

<bundles_post_ra>
// kernel: dil_conv.3
= control target key start
LH: loop header
LB: loop body
LE: loop exit
PB: predicated region body
PF: predicated region fallthrough
CT: control target
= control target key end

     0   :  { %s376_s18 = smov 0   ;;  %s405_s0 = inlined_call_operand.vmem [shape: f32[2,8,384], index: 0, kind: input, shape index: {}, may-alias: {0,5}]   ;;  %s406_s1 = inlined_call_operand.vmem [shape: f32[8,1], index: 1, kind: input, shape index: {}]   ;;  %s407_s2 = inlined_call_operand.vmem [shape: f32[8,1], index: 2, kind: input, shape index: {}]   ;;  %s408_s3 = inlined_call_operand.vmem [shape: f32[8,1], index: 3, kind: input, shape index: {}]   ;;  %s409_s4 = inlined_call_operand.vmem [shape: f32[8,1], index: 4, kind: input, shape index: {}]   ;;  %s410_s5 = inlined_call_operand.vmem [shape: f32[2,8,384], index: 5, kind: output, shape index: {}, may-alias: {0,5}]  }
   0x1 LB: > { %s315_s19 = sadd.s32 4294967295, %s343_s18   ;;  %p319_p0 = scmp.ge.s32.totalorder %s343_s18, 1  ;;  %s343_s18 = sphi %s376_s18, %s15_s18  }
   0x2   : > { %p187_p1 = scmp.lt.s32.totalorder %s343_s18, 3 }
   0x4   : > { %p188_p2 = pnand %p319_p0, %p187_p1 }
   0x5   : > { %p215_p3 = scmp.lt.s32.totalorder (!%p188_p2), %s315_s19, 1 }
   0x6   : > { %191 = sbr.rel (%p188_p2) target bundleno = 168 (0xa8), region = 40 }
   0xb   : > { %v225_v0 = vld [vmem:[%s406_s1] sm:$0xff]  ;;  %v345_v2 = vmov 0   ;;  %s412_s19 = smov (!%p215_p3, %s315_s19), 1 }
   0xc   : > { %v227_v1 = vld [vmem:[%s407_s2] sm:$0xff]  ;;  %334 = vset.pattern.permute.xlu0 %v345_v2  ;;  %v226_v3 = vmul.f32 0.001953125, %v225_v0  ;;  %s324_s28 = smul.u32 24, %s412_s19 }
   0xd   : > { %v228_v4 = vmul.f32 0.001953125, %v227_v1  ;;  %v233_v8 = vld [vmem:[%s408_s3] sm:$0xff] }
   0xe   : > { %v229_v5 = vmul.f32 %v226_v3, %v226_v3  ;;  %v235_v11 = vld [vmem:[%s409_s4] sm:$0xff]  ;;  %s219_s6 = scalar_lea.vmem %s405_s0, %s324_s28  ;;  %s224_s9 = scalar_lea.vmem %s410_s5, %s324_s28 }
   0xf   : > { %v238_v15 = vld [vmem:[%s219_s6] sm:$0xff]  ;;  %v239_v16 = vld [vmem:[%s219_s6 + $0x8] sm:$0xff]  ;;  %v240_v17 = vld [vmem:[%s219_s6 + $0x10] sm:$0xff] }
  0x10   : > { %v230_v6 = vsub.f32 %v228_v4, %v229_v5 }
  0x12   : > { %v231_v7 = vadd.f32 1e-05, %v230_v6 }
  0x14   : > { %335 = vrsqrt.f32 %v231_v7 }
  0x21   : > { %v336_v9 = vpop.eup %335 }
  0x22   : > { %v234_v10 = vmul.f32 %v336_v9, %v233_v8 }
  0x24   : > { %243 = vperm.xlu0 %334, %v234_v10   ;;  %v236_v12 = vmul.f32 %v234_v10, %v226_v3 }
  0x26   : > { %v237_v13 = vsub.f32 %v235_v11, %v236_v12 }
  0x28   : > { %251 = vperm.xlu0 %334, %v237_v13  }
  0x9f   : > { %v244_v14 = vpop.permute.xlu0 %243 }
  0xa0   : > { %v246_v18 = vmul.f32 %v244_v14, %v238_v15  ;;  %v247_v19 = vmul.f32 %v244_v14, %v239_v16  ;;  %v248_v20 = vmul.f32 %v244_v14, %v240_v17 }
  0xa3   : > { %v252_v21 = vpop.permute.xlu0 %251 }
  0xa4   : > { %v254_v22 = vadd.f32 %v252_v21, %v246_v18  ;;  %v255_v23 = vadd.f32 %v252_v21, %v247_v19  ;;  %v256_v24 = vadd.f32 %v252_v21, %v248_v20 }
  0xa6   : > { %257 = vst [vmem:[%s224_s9] sm:$0xff] %v254_v22  ;;  %258 = vst [vmem:[%s224_s9 + $0x8] sm:$0xff] %v255_v23 }
  0xa7   : > { %259 = vst [vmem:[%s224_s9 + $0x10] sm:$0xff] %v256_v24 }
  0xa8 PF: > { %s15_s18 = sadd.s32 1, %s343_s18  }
  0xa9   : > { %p12_p4 = scmp.ge.s32.totalorder %s15_s18, 4  }
  0xab   :  { %14 = sbr.rel (!%p12_p4) target bundleno = 1 (0x1), region = 70 }

// kernel: dil_conv.2
= control target key start
LH: loop header
LB: loop body
LE: loop exit
PB: predicated region body
PF: predicated region fallthrough
CT: control target
= control target key end

     0   :  { %s974_s21 = smov 0   ;;  %s1058_s0 = inlined_call_operand.vmem [shape: f32[2,4,512], index: 0, kind: input, shape index: {}]   ;;  %s1059_s1 = inlined_call_operand.vmem [shape: f32[9,4,1], index: 1, kind: input, shape index: {}]   ;;  %s1060_s2 = inlined_call_operand.vmem [shape: f32[8,4], index: 2, kind: input, shape index: {}]   ;;  %s1061_s3 = inlined_call_operand.vmem [shape: f32[1,384], index: 3, kind: input, shape index: {}]   ;;  %s1062_s4 = inlined_call_operand.vmem [shape: f32[2,8,384], index: 4, kind: output, shape index: {0}]   ;;  %s1063_s5 = inlined_call_operand.vmem [shape: f32[2,8,1], index: 5, kind: output, shape index: {1}]   ;;  %s1064_s6 = inlined_call_operand.vmem [shape: f32[2,8,1], index: 6, kind: output, shape index: {2}]  }
   0x1 LB: > { %s863_s22 = sadd.s32 4294967295, %s925_s21   ;;  %p867_p0 = scmp.ge.s32.totalorder %s925_s21, 1  ;;  %s925_s21 = sphi %s974_s21, %s17_s21  }
   0x2   : > { %p217_p1 = scmp.lt.s32.totalorder %s925_s21, 3 }
   0x4   : > { %p218_p2 = pnand %p867_p0, %p217_p1 }
   0x5   : > { %p255_p3 = scmp.lt.s32.totalorder (!%p218_p2), %s863_s22, 1  ;;  %s929_s23 = smov (!%p218_p2), 126  }
   0x6   : > { %221 = sbr.rel (%p218_p2) target bundleno = 636 (0x27c), region = 36  ;;  %s930_s24 = smov (!%p218_p2), 124  }
   0x7   : > { %s931_s25 = smov (!%p218_p2), 88   ;;  %s932_s26 = smov (!%p218_p2), 86  }
   0x8   : > { %s933_s27 = smov (!%p218_p2), 84   ;;  %s934_s28 = smov (!%p218_p2), 48  }
   0x9   : > { %s936_s29 = smov (!%p218_p2), 46   ;;  %s937_s30 = smov (!%p218_p2), 44  }
   0xb   : > { %v875_v0 = vld [vmem:[%s1059_s1 + $0xc] sm:$0xf]  ;;  %v873_v1 = vld [vmem:[%s1059_s1 + $0x4] sm:$0xf]  ;;  %v927_v2 = vmov 0   ;;  %s1066_s22 = smov (!%p255_p3, %s863_s22), 1  ;;  %v285_v12 = vlaneseq }
   0xc   : > { %918 = vset.pattern.permute.xlu1 %v927_v2  ;;  %917 = vset.pattern.permute.xlu0 %v927_v2  ;;  %v876_v3 = vld [vmem:[%s1059_s1 + $0x10] sm:$0xf]  ;;  %v874_v4 = vld [vmem:[%s1059_s1 + $0x8] sm:$0xf]  ;;  %v878_v5 = vld [vmem:[%s1059_s1 + $0x18] sm:$0xf] }
   0xd   : > { %367 = vperm.xlu1 %918, %v875_v0   ;;  %302 = vperm.xlu0 %917, %v873_v1   ;;  %v877_v6 = vld [vmem:[%s1059_s1 + $0x14] sm:$0xf]  ;;  %v880_v7 = vld [vmem:[%s1059_s1 + $0x20] sm:$0xf]  ;;  %v879_v8 = vld [vmem:[%s1059_s1 + $0x1c] sm:$0xf] }
   0xe   : > { %v277_v9 = vld [vmem:[%s1059_s1] sm:$0xf]  ;;  %v928_v10 = vmov 839922192   ;;  %s888_s17 = sshll.u32 %s1066_s22, 4  ;;  %v1012_v14 = vshrl.u32 %v285_v12, 7 }
   0xf   : > { %v283_v11 = vunpack.c.l.s4 %v928_v10  ;;  %s259_s20 = scalar_lea.vmem %s1058_s0, %s888_s17  ;;  %v935_v53 = vmov 0.0   ;;  %vm938_vm0 = vmmov 0   ;;  %vm322_vm1 = vcmask 1043456   ;;  %s896_s11 = smul.u32 24, %s1066_s22 }
  0x10   : > { %v294_v15 = vld [vmem:[%s259_s20] sm:$0xff]  ;;  %v295_v16 = vld [vmem:[%s259_s20 + $0x8] sm:$0xff]  ;;  %891 = vmatprep.subr.mxu1 %v935_v53  ;;  %652 = vmatprep.mubr.f32.mxu0 %v935_v53  ;;  %vm324_vm2 = vcmask 1031168   ;;  %vm356_vm3 = vcmask 1014784   ;;  %vm388_vm4 = vcmask 719872   ;;  %vm420_vm5 = vcmask 703488  }
  0x11   : > { %399 = vperm.xlu1 %918, %v876_v3   ;;  %335 = vperm.xlu0 %917, %v874_v4   ;;  %v284_v13 = vunpack.c.0.s8 %v283_v11  ;;  %v296_v18 = vmax.f32 %v294_v15, 0.0  ;;  %v297_v19 = vmax.f32 %v295_v16, 0.0  ;;  %v274_v36 = vld [vmem:[%s259_s20 + $0x8] sm:$0xf]  ;;  %vm452_vm6 = vcmask 687104   ;;  %s264_s14 = scalar_lea.vmem %s1062_s4, %s896_s11  ;;  %s871_s15 = sshll.u32 %s1066_s22, 3 }
  0x12   : > { %v276_v41 = vmax.f32 %v274_v36, 0.0  ;;  %893 = vmatprep.mubr.msk.f32.mxu1 %vm938_vm0, %v935_v53  ;;  %vm484_vm7 = vcmask 392192   ;;  %vm516_vm8 = vcmask 375808   ;;  %vm548_vm9 = vcmask 359424   ;;  %s268_s18 = scalar_lea.vmem %s1063_s5, %s871_s15 }
  0x13   : > { %v287_v17 = vsub.s32 %v284_v13, %v1012_v14  ;;  %vm578_vm10 = vcmask 31744   ;;  %vm736_vm11 = vcmask 7168  }
  0x15   : > { %463 = vperm.xlu1 %918, %v878_v5   ;;  %431 = vperm.xlu0 %917, %v877_v6  }
  0x19   : > { %527 = vperm.xlu1 %918, %v880_v7   ;;  %495 = vperm.xlu0 %917, %v879_v8  }
  0x1d   : > { %280 = vperm.xlu0 %917, %v277_v9  }
  0x88   : > { %v303_v20 = vpop.permute.xlu0 %302  ;;  %v368_v22 = vpop.permute.xlu1 %367 }
  0x89   : > { %v310_v21 = vrot.slane %v303_v20, %v287_v17  ;;  %v375_v26 = vrot.slane %v368_v22, %v287_v17 }
  0x8b   : > { %v312_v23 = vmul.f32 %v310_v21, %v296_v18  ;;  %v313_v24 = vmul.f32 %v310_v21, %v297_v19  ;;  %v377_v31 = vmul.f32 %v375_v26, %v296_v18  ;;  %v378_v32 = vmul.f32 %v375_v26, %v297_v19 }
  0x8c   : > { %v336_v25 = vpop.permute.xlu0 %335  ;;  %v400_v33 = vpop.permute.xlu1 %399 }
  0x8d   : > { %v343_v27 = vrot.slane %v336_v25, %v287_v17  ;;  %318 = vrot.lane.b32.xlu0 %v313_v24, %s929_s23  ;;  %316 = vrot.lane.b32.xlu1 %v312_v23, %s929_s23  ;;  %v407_v34 = vrot.slane %v400_v33, %v287_v17  ;;  %s272_s23 = scalar_lea.vmem %s1064_s6, %s871_s15 }
  0x8f   : > { %v345_v28 = vmul.f32 %v343_v27, %v296_v18  ;;  %v346_v29 = vmul.f32 %v343_v27, %v297_v19  ;;  %v409_v37 = vmul.f32 %v407_v34, %v296_v18  ;;  %v410_v38 = vmul.f32 %v407_v34, %v297_v19 }
  0x90   : > { %v432_v30 = vpop.permute.xlu0 %431  ;;  %v464_v39 = vpop.permute.xlu1 %463 }
  0x91   : > { %351 = vrot.lane.b32.xlu0 %v346_v29, %s930_s24  ;;  %349 = vrot.lane.b32.xlu1 %v345_v28, %s930_s24  ;;  %v439_v40 = vrot.slane %v432_v30, %v287_v17  ;;  %v471_v44 = vrot.slane %v464_v39, %v287_v17 }
  0x93   : > { %v441_v45 = vmul.f32 %v439_v40, %v296_v18  ;;  %v442_v46 = vmul.f32 %v439_v40, %v297_v19  ;;  %v473_v49 = vmul.f32 %v471_v44, %v296_v18  ;;  %v474_v50 = vmul.f32 %v471_v44, %v297_v19 }
  0x94   : > { %v496_v35 = vpop.permute.xlu0 %495  ;;  %v528_v52 = vpop.permute.xlu1 %527 }
  0x95   : > { %383 = vrot.lane.b32.xlu0 %v378_v32, %s931_s25  ;;  %381 = vrot.lane.b32.xlu1 %v377_v31, %s931_s25  ;;  %v503_v51 = vrot.slane %v496_v35, %v287_v17  ;;  %v535_v54 = vrot.slane %v528_v52, %v287_v17 }
  0x97   : > { %v505_v55 = vmul.f32 %v503_v51, %v296_v18  ;;  %v506_v56 = vmul.f32 %v503_v51, %v297_v19  ;;  %v537_v57 = vmul.f32 %v535_v54, %v296_v18  ;;  %v538_v58 = vmul.f32 %v535_v54, %v297_v19 }
  0x98   : > { %v281_v42 = vpop.permute.xlu0 %280  ;;  %v567_v54 = vsub.s32 2, %v1012_v14 }
  0x99   : > { %v288_v43 = vrot.slane %v281_v42, %v287_v17  ;;  %415 = vrot.lane.b32.xlu0 %v410_v38, %s932_s26  ;;  %413 = vrot.lane.b32.xlu1 %v409_v37, %s932_s26  ;;  %v559_v38 = vsub.s32 0, %v1012_v14  ;;  %v555_v42 = vld [vmem:[%s1061_s3] sm:$0x7] }
  0x9b   : > { %v290_v47 = vmul.f32 %v296_v18, %v288_v43  ;;  %v291_v48 = vmul.f32 %v288_v43, %v276_v41  ;;  %v563_v43 = vsub.s32 1, %v1012_v14 }
  0x9d   : > { %447 = vrot.lane.b32.xlu0 %v442_v46, %s933_s27  ;;  %445 = vrot.lane.b32.xlu1 %v441_v45, %s933_s27 }
  0xa1   : > { %479 = vrot.lane.b32.xlu0 %v474_v50, %s934_s28  ;;  %477 = vrot.lane.b32.xlu1 %v473_v49, %s934_s28 }
  0xa5   : > { %511 = vrot.lane.b32.xlu0 %v506_v56, %s936_s29  ;;  %509 = vrot.lane.b32.xlu1 %v505_v55, %s936_s29  ;;  %v560_v55 = vrot.slane %v555_v42, %v559_v38 }
  0xa9   : > { %543 = vrot.lane.b32.xlu0 %v538_v58, %s937_s30  ;;  %541 = vrot.lane.b32.xlu1 %v537_v57, %s937_s30 }
  0xff   : > { %v319_v59 = vpop.permute.xlu0 %318  ;;  %v317_v60 = vpop.permute.xlu1 %316 }
 0x100   : > { %v321_v63 = vrot.slane %v319_v59, 4  ;;  %v320_v0 = vrot.slane %v317_v60, 4 }
 0x102   : > { %v323_v5 = vsel %vm322_vm1, %v320_v0, %v321_v63  ;;  %v326_v11 = vsel %vm324_vm2, %v319_v59, %v321_v63  ;;  %v564_v59 = vrot.slane %v555_v42, %v563_v43 }
 0x103   : > { %v352_v61 = vpop.permute.xlu0 %351  ;;  %v350_v62 = vpop.permute.xlu1 %349  ;;  %v325_v12 = vsel %vm324_vm2, %v317_v60, %v323_v5  ;;  %v330_v23 = vadd.f32 %v326_v11, %v291_v48 }
 0x104   : > { %v354_v3 = vrot.slane %v352_v61, 4  ;;  %v353_v4 = vrot.slane %v350_v62, 4  ;;  %v329_v24 = vadd.f32 %v325_v12, %v290_v47 }
 0x106   : > { %v355_v10 = vsel %vm322_vm1, %v353_v4, %v354_v3  ;;  %v358_v16 = vsel %vm356_vm3, %v352_v61, %v354_v3  ;;  %v568_v4 = vrot.slane %v555_v42, %v567_v54 }
 0x107   : > { %v384_v1 = vpop.permute.xlu0 %383  ;;  %v382_v2 = vpop.permute.xlu1 %381  ;;  %v357_v19 = vsel %vm356_vm3, %v350_v62, %v355_v10  ;;  %v362_v27 = vadd.f32 %v358_v16, %v330_v23 }
 0x108   : > { %v386_v8 = vrot.slane %v384_v1, 4  ;;  %v385_v9 = vrot.slane %v382_v2, 4  ;;  %v361_v28 = vadd.f32 %v357_v19, %v329_v24 }
 0x10a   : > { %v387_v20 = vsel %vm322_vm1, %v385_v9, %v386_v8  ;;  %v390_v25 = vsel %vm388_vm4, %v384_v1, %v386_v8 }
 0x10b   : > { %v416_v6 = vpop.permute.xlu0 %415  ;;  %v414_v7 = vpop.permute.xlu1 %413  ;;  %v389_v29 = vsel %vm388_vm4, %v382_v2, %v387_v20  ;;  %v394_v36 = vadd.f32 %v390_v25, %v362_v27 }
 0x10c   : > { %v418_v13 = vrot.slane %v416_v6, 4  ;;  %v417_v15 = vrot.slane %v414_v7, 4  ;;  %v393_v39 = vadd.f32 %v389_v29, %v361_v28 }
 0x10e   : > { %v419_v26 = vsel %vm322_vm1, %v417_v15, %v418_v13  ;;  %v422_v32 = vsel %vm420_vm5, %v416_v6, %v418_v13  ;;  %v574_v13 = vld [vmem:[%s1060_s2] sm:$0xff] }
 0x10f   : > { %v448_v17 = vpop.permute.xlu0 %447  ;;  %v446_v18 = vpop.permute.xlu1 %445  ;;  %v421_v37 = vsel %vm420_vm5, %v414_v7, %v419_v26  ;;  %v426_v44 = vadd.f32 %v422_v32, %v394_v36  ;;  %v570_v7 = vcombine.low %v560_v55, %v564_v59 }
 0x110   : > { %v450_v21 = vrot.slane %v448_v17, 4  ;;  %v449_v22 = vrot.slane %v446_v18, 4  ;;  %v425_v48 = vadd.f32 %v421_v37, %v393_v39 }
 0x112   : > { %v451_v33 = vsel %vm322_vm1, %v449_v22, %v450_v21  ;;  %v454_v40 = vsel %vm452_vm6, %v448_v17, %v450_v21 }
 0x113   : > { %v480_v30 = vpop.permute.xlu0 %479  ;;  %v478_v31 = vpop.permute.xlu1 %477  ;;  %v453_v45 = vsel %vm452_vm6, %v446_v18, %v451_v33  ;;  %v458_v52 = vadd.f32 %v454_v40, %v426_v44 }
 0x114   : > { %v482_v34 = vrot.slane %v480_v30, 4  ;;  %v481_v35 = vrot.slane %v478_v31, 4  ;;  %v457_v56 = vadd.f32 %v453_v45, %v425_v48 }
 0x116   : > { %v483_v41 = vsel %vm322_vm1, %v481_v35, %v482_v34  ;;  %v486_v49 = vsel %vm484_vm7, %v480_v30, %v482_v34 }
 0x117   : > { %v512_v46 = vpop.permute.xlu0 %511  ;;  %v510_v47 = vpop.permute.xlu1 %509  ;;  %v485_v53 = vsel %vm484_vm7, %v478_v31, %v483_v41  ;;  %v490_v60 = vadd.f32 %v486_v49, %v458_v52 }
 0x118   : > { %v514_v50 = vrot.slane %v512_v46, 4  ;;  %v513_v51 = vrot.slane %v510_v47, 4  ;;  %v489_v0 = vadd.f32 %v485_v53, %v457_v56 }
 0x11a   : > { %v518_v57 = vsel %vm516_vm8, %v512_v46, %v514_v50  ;;  %v515_v58 = vsel %vm322_vm1, %v513_v51, %v514_v50 }
 0x11b   : > { %v517_v61 = vsel %vm516_vm8, %v510_v47, %v515_v58  ;;  %v544_v62 = vpop.permute.xlu0 %543  ;;  %v542_v63 = vpop.permute.xlu1 %541  ;;  %v522_v3 = vadd.f32 %v518_v57, %v490_v60 }
 0x11c   : > { %v546_v1 = vrot.slane %v544_v62, 4  ;;  %v545_v2 = vrot.slane %v542_v63, 4  ;;  %v521_v5 = vadd.f32 %v517_v61, %v489_v0 }
 0x11e   : > { %v550_v14 = vsel %vm548_vm9, %v544_v62, %v546_v1  ;;  %v547_v6 = vsel %vm322_vm1, %v545_v2, %v546_v1 }
 0x11f   : > { %v554_v8 = vadd.f32 %v550_v14, %v522_v3  ;;  %v549_v9 = vsel %vm548_vm9, %v542_v63, %v547_v6 }
 0x120   : > { %v553_v10 = vadd.f32 %v549_v9, %v521_v5 }
 0x121   : > { %v573_v11 = vmul.f32 %v568_v4, %v554_v8 }
 0x122   : > { %v572_v12 = vmul.f32 %v570_v7, %v553_v10 }
 0x123   : > { %892 = vmatpush3.msk.msra.mxu1 %vm322_vm1, %v573_v11 }
 0x124   : > { %v577_v15 = vcombine.high %v572_v12, %v572_v12  ;;  %894 = vmatmul.mubr.msk.f32.vlgmr.msra.gmra.mxu1 %vm578_vm10, %v574_v13 }
 0x126   : > { %881 = vmatprep.subr.msk.mxu0 %vm322_vm1, %v577_v15 }
 0x127   : > { %882 = vmatpush1.msk.msra.mxu0 %vm322_vm1, %v572_v12 }
 0x128   : > { %883 = vmatmul.mubr.msk.f32.vlgmr.msra.gmra.mxu0 %vm578_vm10, %v574_v13 }
 0x1e4   : > { %v725_v16 = vpop.f32.mrf.mxu1 }
 0x1e5   : > { %731 = vst [vmem:[%s264_s14 + $0x10] sm:$0xff] %v725_v16  ;;  %v740_v23 = vmul.f32 %v725_v16, %v725_v16 }
 0x1e6   : > { %v895_v17 = vpop.f32.mrf.mxu1 }
 0x1e8   : > { %v654_v18 = vpop.f32.mrf.mxu0 }
 0x1e9   : > { %729 = vst [vmem:[%s264_s14] sm:$0xff] %v654_v18  ;;  %v738_v20 = vmul.f32 %v654_v18, %v654_v18 }
 0x1ea   : > { %v656_v19 = vpop.f32.mrf.mxu0 }
 0x1eb   : > { %730 = vst [vmem:[%s264_s14 + $0x8] sm:$0xff] %v656_v19  ;;  %v732_v21 = vadd.f32 %v656_v19, %v654_v18  ;;  %v739_v22 = vmul.f32 %v656_v19, %v656_v19 }
 0x1ed   : > { %v733_v24 = vadd.f32 %v732_v21, %v725_v16  ;;  %v741_v25 = vadd.f32 %v739_v22, %v738_v20 }
 0x1ef   : > { %734 = vadd.xlane.f32.xlu1 %v733_v24  ;;  %v742_v26 = vadd.f32 %v741_v25, %v740_v23 }
 0x1f1   : > { %743 = vadd.xlane.f32.xlu0 %v742_v26 }
 0x278   : > { %v735_v27 = vpop.xlane.xlu1 %734 }
 0x279   : > { %737 = vst.msk [vmem:[%s268_s18] sm:$0xff] %vm736_vm11, %v735_v27 }
 0x27a   : > { %v744_v28 = vpop.xlane.xlu0 %743 }
 0x27b   : > { %745 = vst.msk [vmem:[%s272_s23] sm:$0xff] %vm736_vm11, %v744_v28 }
 0x27c PF: > { %s17_s21 = sadd.s32 1, %s925_s21  }
 0x27d   : > { %p14_p4 = scmp.ge.s32.totalorder %s17_s21, 4  }
 0x27f   :  { %16 = sbr.rel (!%p14_p4) target bundleno = 1 (0x1), region = 98 }

</bundles_post_ra>
